<compile_context>
chip_gen: v7x
topology: tpu7x:2x2x1
jax: 0.10.0
libtpu: 0.0.40
codegen_flags: <defaults>
</compile_context>

<pallas_src>
import functools

import jax
import jax.numpy as jnp
from jax import lax
from jax.experimental import pallas as pl
from jax.experimental.pallas import tpu as pltpu


# -----------------------------------------------------------------------------
# Kernel
# -----------------------------------------------------------------------------
def _decoder_kernel(use_attention, *refs):
    if use_attention:
        (x_proj_ref,    # VMEM (N, H)      emb[ids] @ W_ih^T + b_ih + b_hh
         hid_ref,       # VMEM (N, H)      previous hidden state
         enc_ref,       # VMEM (N, T, H)   encoder outputs
         inv_kn_ref,    # VMEM (N, 1, T)   precomputed 1/||enc|| (step-invariant)
         w_hh_t_ref,    # VMEM (H, H)      RNN hidden weight (transposed)
         w_lin_t_ref,   # VMEM (H, O_pad)  output projection (transposed, padded)
         b_lin_ref,     # VMEM (1, O_pad)  output bias (padded with -1e30)
         out_ref,       # VMEM (N, O_pad)  log-softmax output
         hid_out_ref,   # VMEM (N, H)      new hidden state
         ) = refs
    else:
        (x_proj_ref, hid_ref,
         w_hh_t_ref, w_lin_t_ref, b_lin_ref,
         out_ref, hid_out_ref) = refs

    # ---- cosine-similarity attention over encoder outputs -------------------
    if use_attention:
        enc = enc_ref[...]                                     # (N, T, H)
        h3 = hid_ref[...][:, None, :]                          # (N, 1, H)
        # q @ K^T on the MXU (batched matmul)
        prod = jnp.einsum("nqh,nth->nqt", h3, enc,
                          preferred_element_type=jnp.float32)  # (N, 1, T)
        # 1/|q| via EUP rsqrt (eps-clamped denominator)
        inv_q = lax.rsqrt(jnp.maximum(
            jnp.sum(h3 * h3, axis=-1, keepdims=True), 1e-12))  # (N, 1, 1)
        cos = prod * inv_q * inv_kn_ref[...]                   # (N, 1, T)
        cos = cos - jnp.max(cos, axis=-1, keepdims=True)
        e = jnp.exp(cos)
        attn = e * pl.reciprocal(jnp.sum(e, axis=-1, keepdims=True),
                                 approx=True)                  # (N, 1, T)
        # context replaces the controller state: attn @ encoder_outputs
        h_in = jnp.einsum("nqt,nth->nqh", attn, enc,
                          preferred_element_type=jnp.float32)[:, 0, :]  # (N, H)
    else:
        h_in = hid_ref[...]                                    # (N, H)

    # ---- single-step vanilla RNN (tanh); input proj + biases pre-folded -----
    h_new = jnp.tanh(
        x_proj_ref[...]
        + jnp.dot(h_in, w_hh_t_ref[...], preferred_element_type=jnp.float32))
    hid_out_ref[...] = h_new                                   # (N, H)

    # ---- lane-dense output projection + log_softmax --------------------------
    logits = (jnp.dot(h_new, w_lin_t_ref[...],
                      preferred_element_type=jnp.float32)
              + b_lin_ref[...])                                # (N, O_pad)
    m = jnp.max(logits, axis=-1, keepdims=True)
    shifted = logits - m
    lse = jnp.log(jnp.sum(jnp.exp(shifted), axis=-1, keepdims=True))
    out_ref[...] = shifted - lse


# -----------------------------------------------------------------------------
# Wrapper
# -----------------------------------------------------------------------------
def decoder_forward(params, input_idx, hidden, encoder_outputs=None,
                    attention=True):
    N = input_idx.shape[0]
    H = params["w_hh"].shape[0]
    O = params["w_lin"].shape[0]
    O_pad = max(128, ((O + 127) // 128) * 128)   # lane-dense output width

    idx = input_idx.reshape(N).astype(jnp.int32)
    hid2d = hidden.reshape(N, H).astype(jnp.float32)

    # Fold embedding gather + input projection + both RNN biases into one
    # small (N, H) tensor on the host/XLA side (dropout = identity in eval).
    x_proj = (params["emb"].astype(jnp.float32)[idx]
              @ params["w_ih"].astype(jnp.float32).T
              + params["b_ih"].astype(jnp.float32)
              + params["b_hh"].astype(jnp.float32))            # (N, H)

    w_hh_t = params["w_hh"].astype(jnp.float32).T              # (H, H)

    # Pad the output projection to a lane-dense width: zero weight columns,
    # -1e30 bias so padded logits never affect max / log-sum-exp.
    w_lin_t = params["w_lin"].astype(jnp.float32).T            # (H, O)
    w_lin_t_pad = jnp.pad(w_lin_t, ((0, 0), (0, O_pad - O)))
    b_lin_pad = jnp.pad(params["b_lin"].astype(jnp.float32),
                        (0, O_pad - O),
                        constant_values=-1e30).reshape(1, O_pad)

    inputs = [x_proj, hid2d]
    in_specs = [pl.BlockSpec((N, H), lambda i: (0, 0)),
                pl.BlockSpec((N, H), lambda i: (0, 0))]

    if attention:
        enc = encoder_outputs.astype(jnp.float32)              # (N, T, H)
        T = enc.shape[1]
        # step-invariant key norms hoisted out of the kernel (eps-clamped)
        inv_k_norm = lax.rsqrt(
            jnp.maximum(jnp.sum(enc * enc, axis=-1), 1e-12)).reshape(N, 1, T)
        inputs += [enc, inv_k_norm]
        in_specs += [pl.BlockSpec((N, T, H), lambda i: (0, 0, 0)),
                     pl.BlockSpec((N, 1, T), lambda i: (0, 0, 0))]

    inputs += [w_hh_t, w_lin_t_pad, b_lin_pad]
    in_specs += [pl.BlockSpec((H, H), lambda i: (0, 0)),
                 pl.BlockSpec((H, O_pad), lambda i: (0, 0)),
                 pl.BlockSpec((1, O_pad), lambda i: (0, 0))]

    kernel = functools.partial(_decoder_kernel, attention)

    out_pad, hid_new = pl.pallas_call(
        kernel,
        out_shape=(jax.ShapeDtypeStruct((N, O_pad), jnp.float32),
                   jax.ShapeDtypeStruct((N, H), jnp.float32)),
        grid_spec=pltpu.PrefetchScalarGridSpec(
            num_scalar_prefetch=0,
            grid=(1,),
            in_specs=in_specs,
            out_specs=(pl.BlockSpec((N, O_pad), lambda i: (0, 0)),
                       pl.BlockSpec((N, H), lambda i: (0, 0))),
        ),
        compiler_params=pltpu.CompilerParams(
            dimension_semantics=("arbitrary",)),
    )(*inputs)

    return out_pad[:, :O], hid_new.reshape(1, N, H)


# -----------------------------------------------------------------------------
# Pure-JAX reference (for correctness check)
# -----------------------------------------------------------------------------
def decoder_reference(params, input_idx, hidden, encoder_outputs=None,
                      attention=True):
    N = input_idx.shape[0]
    emb = params["emb"][input_idx.reshape(N)]          # (N, E)
    h = hidden.reshape(N, -1)
    if attention:
        enc = encoder_outputs
        prod = jnp.einsum("nh,nth->nt", h, enc)
        q_norm = jnp.linalg.norm(h, axis=-1, keepdims=True)
        k_norm = jnp.linalg.norm(enc, axis=-1)
        attn = jax.nn.softmax(prod / (q_norm * k_norm), axis=-1)
        h = jnp.einsum("nt,nth->nh", attn, enc)
    h_new = jnp.tanh(emb @ params["w_ih"].T + params["b_ih"]
                     + h @ params["w_hh"].T + params["b_hh"])
    logits = h_new @ params["w_lin"].T + params["b_lin"]
    return jax.nn.log_softmax(logits, axis=-1), h_new.reshape(1, N, -1)


# -----------------------------------------------------------------------------
# Main
# -----------------------------------------------------------------------------
if __name__ == "__main__":
    # Small config: emb_size=32, encoder_hidden=decoder_hidden=32, output_size=40
    N, T = 2, 8
    E, H, O = 32, 32, 40

    key = jax.random.PRNGKey(0)
    keys = jax.random.split(key, 10)

    params = {
        "emb":   jax.random.normal(keys[0], (O, E), jnp.float32),
        "w_ih":  jax.random.uniform(keys[1], (H, E), jnp.float32, -1.0, 1.0) / jnp.sqrt(H),
        "w_hh":  jax.random.uniform(keys[2], (H, H), jnp.float32, -1.0, 1.0) / jnp.sqrt(H),
        "b_ih":  jax.random.uniform(keys[3], (H,),   jnp.float32, -1.0, 1.0) / jnp.sqrt(H),
        "b_hh":  jax.random.uniform(keys[4], (H,),   jnp.float32, -1.0, 1.0) / jnp.sqrt(H),
        "w_lin": jax.random.uniform(keys[5], (O, H), jnp.float32, -1.0, 1.0) / jnp.sqrt(H),
        "b_lin": jax.random.uniform(keys[6], (O,),   jnp.float32, -1.0, 1.0) / jnp.sqrt(H),
    }

    input_idx = jax.random.randint(keys[7], (N, 1), 0, O, jnp.int32)      # (N, 1)
    hidden = jax.random.normal(keys[8], (1, N, H), jnp.float32)           # (1, N, H)
    encoder_outputs = jax.random.normal(keys[9], (N, T, H), jnp.float32)  # (N, T, H)

    # --- with attention ---
    out, hid_new = decoder_forward(params, input_idx, hidden,
                                   encoder_outputs, attention=True)
    out = jax.block_until_ready(out)
    hid_new = jax.block_until_ready(hid_new)
    ref_out, ref_hid = decoder_reference(params, input_idx, hidden,
                                         encoder_outputs, attention=True)
    assert out.shape == (N, O) and hid_new.shape == (1, N, H)
    assert jnp.allclose(out, ref_out, atol=1e-3, rtol=1e-3)
    assert jnp.allclose(hid_new, ref_hid, atol=1e-3, rtol=1e-3)

    # --- without attention ---
    out2, hid2 = decoder_forward(params, input_idx, hidden,
                                 encoder_outputs, attention=False)
    out2 = jax.block_until_ready(out2)
    hid2 = jax.block_until_ready(hid2)
    ref_out2, ref_hid2 = decoder_reference(params, input_idx, hidden,
                                           encoder_outputs, attention=False)
    assert jnp.allclose(out2, ref_out2, atol=1e-3, rtol=1e-3)
    assert jnp.allclose(hid2, ref_hid2, atol=1e-3, rtol=1e-3)

    print("KERNEL_OK")
</pallas_src>

<mosaic_0001>
module attributes {stable_mosaic.version = 11 : i64} {
  func.func @_decoder_kernel(%arg0: i32, %arg1: memref<2x32xf32, #tpu.memory_space<vmem>>, %arg2: memref<2x32xf32, #tpu.memory_space<vmem>>, %arg3: memref<2x8x32xf32, #tpu.memory_space<vmem>>, %arg4: memref<2x1x8xf32, #tpu.memory_space<vmem>>, %arg5: memref<32x32xf32, #tpu.memory_space<vmem>>, %arg6: memref<32x128xf32, #tpu.memory_space<vmem>>, %arg7: memref<1x128xf32, #tpu.memory_space<vmem>>, %arg8: memref<2x128xf32, #tpu.memory_space<vmem>>, %arg9: memref<2x32xf32, #tpu.memory_space<vmem>>) attributes {dimension_semantics = [#tpu.dimension_semantics<arbitrary>], iteration_bounds = array<i64: 1>, scalar_prefetch = 0 : i64, scratch_operands = 0 : i64, tpu.core_type = #tpu.core_type<tc>, window_params = [{pipeline_mode = #tpu.pipeline_mode<synchronous>, transform_indices = @transform_0, window_bounds = array<i64: 2, 32>}, {pipeline_mode = #tpu.pipeline_mode<synchronous>, transform_indices = @transform_1, window_bounds = array<i64: 2, 32>}, {pipeline_mode = #tpu.pipeline_mode<synchronous>, transform_indices = @transform_2, window_bounds = array<i64: 2, 8, 32>}, {pipeline_mode = #tpu.pipeline_mode<synchronous>, transform_indices = @transform_3, window_bounds = array<i64: 2, 1, 8>}, {pipeline_mode = #tpu.pipeline_mode<synchronous>, transform_indices = @transform_4, window_bounds = array<i64: 32, 32>}, {pipeline_mode = #tpu.pipeline_mode<synchronous>, transform_indices = @transform_5, window_bounds = array<i64: 32, 128>}, {pipeline_mode = #tpu.pipeline_mode<synchronous>, transform_indices = @transform_6, window_bounds = array<i64: 1, 128>}, {pipeline_mode = #tpu.pipeline_mode<synchronous>, transform_indices = @transform_7, window_bounds = array<i64: 2, 128>}, {pipeline_mode = #tpu.pipeline_mode<synchronous>, transform_indices = @transform_8, window_bounds = array<i64: 2, 32>}]} {
    %c0 = arith.constant 0 : index
    %c0_0 = arith.constant 0 : index
    %c0_1 = arith.constant 0 : index
    %0 = vector.load %arg3[%c0, %c0_0, %c0_1] : memref<2x8x32xf32, #tpu.memory_space<vmem>>, vector<2x8x32xf32>
    %c0_2 = arith.constant 0 : index
    %c0_3 = arith.constant 0 : index
    %1 = vector.load %arg2[%c0_2, %c0_3] : memref<2x32xf32, #tpu.memory_space<vmem>>, vector<2x32xf32>
    %2 = vector.shape_cast %1 : vector<2x32xf32> to vector<2x1x32xf32>
    "tpu.trace_start"() <{level = 10 : i32, message = "nqh,nth->nqt"}> : () -> ()
    %cst = arith.constant dense<0.000000e+00> : vector<2x1x8xf32>
    %3 = tpu.matmul %2, %0, %cst {dimension_numbers = #tpu.dot_dimension_numbers<[2], [2], [1], [1], [0, 0, 0, 1, 1, 1], [0], [0]>} : vector<2x1x32xf32>, vector<2x8x32xf32>, vector<2x1x8xf32> -> vector<2x1x8xf32>
    "tpu.trace_stop"() : () -> ()
    %4 = arith.mulf %2, %2 : vector<2x1x32xf32>
    %cst_4 = arith.constant dense<0.000000e+00> : vector<2x1xf32>
    %5 = vector.multi_reduction <add>, %4, %cst_4 [2] : vector<2x1x32xf32> to vector<2x1xf32>
    %6 = vector.shape_cast %5 : vector<2x1xf32> to vector<2x1x1xf32>
    %cst_5 = arith.constant 9.99999996E-13 : f32
    %7 = vector.broadcast %cst_5 : f32 to vector<2x1x1xf32>
    %8 = arith.maximumf %6, %7 : vector<2x1x1xf32>
    %9 = math.rsqrt %8 : vector<2x1x1xf32>
    %10 = vector.broadcast %9 : vector<2x1x1xf32> to vector<2x1x8xf32>
    %11 = arith.mulf %3, %10 : vector<2x1x8xf32>
    %c0_6 = arith.constant 0 : index
    %c0_7 = arith.constant 0 : index
    %c0_8 = arith.constant 0 : index
    %12 = vector.load %arg4[%c0_6, %c0_7, %c0_8] : memref<2x1x8xf32, #tpu.memory_space<vmem>>, vector<2x1x8xf32>
    %13 = arith.mulf %11, %12 : vector<2x1x8xf32>
    %cst_9 = arith.constant dense<0xFF800000> : vector<2x1xf32>
    %14 = vector.multi_reduction <maximumf>, %13, %cst_9 [2] : vector<2x1x8xf32> to vector<2x1xf32>
    %15 = vector.shape_cast %14 : vector<2x1xf32> to vector<2x1x1xf32>
    %16 = vector.broadcast %15 : vector<2x1x1xf32> to vector<2x1x8xf32>
    %17 = arith.subf %13, %16 : vector<2x1x8xf32>
    %18 = math.exp %17 : vector<2x1x8xf32>
    %cst_10 = arith.constant dense<0.000000e+00> : vector<2x1xf32>
    %19 = vector.multi_reduction <add>, %18, %cst_10 [2] : vector<2x1x8xf32> to vector<2x1xf32>
    %20 = vector.shape_cast %19 : vector<2x1xf32> to vector<2x1x1xf32>
    %21 = tpu.reciprocal %20 {approx = true} : vector<2x1x1xf32> -> vector<2x1x1xf32>
    %22 = vector.broadcast %21 : vector<2x1x1xf32> to vector<2x1x8xf32>
    %23 = arith.mulf %18, %22 : vector<2x1x8xf32>
    "tpu.trace_start"() <{level = 10 : i32, message = "nqt,nth->nqh"}> : () -> ()
    %cst_11 = arith.constant dense<0.000000e+00> : vector<2x1x32xf32>
    %24 = tpu.matmul %23, %0, %cst_11 {dimension_numbers = #tpu.dot_dimension_numbers<[2], [1], [1], [2], [0, 0, 0, 1, 1, 2], [0], [0]>} : vector<2x1x8xf32>, vector<2x8x32xf32>, vector<2x1x32xf32> -> vector<2x1x32xf32>
    "tpu.trace_stop"() : () -> ()
    %25 = vector.shape_cast %24 : vector<2x1x32xf32> to vector<2x32xf32>
    %c0_12 = arith.constant 0 : index
    %c0_13 = arith.constant 0 : index
    %26 = vector.load %arg1[%c0_12, %c0_13] : memref<2x32xf32, #tpu.memory_space<vmem>>, vector<2x32xf32>
    %c0_14 = arith.constant 0 : index
    %c0_15 = arith.constant 0 : index
    %27 = vector.load %arg5[%c0_14, %c0_15] : memref<32x32xf32, #tpu.memory_space<vmem>>, vector<32x32xf32>
    %cst_16 = arith.constant dense<0.000000e+00> : vector<2x32xf32>
    %28 = tpu.matmul %25, %27, %cst_16 {dimension_numbers = #tpu.dot_dimension_numbers<[1], [0], [0], [1], [0, 0, 1, 1], [], []>} : vector<2x32xf32>, vector<32x32xf32>, vector<2x32xf32> -> vector<2x32xf32>
    %29 = arith.addf %26, %28 : vector<2x32xf32>
    %30 = math.tanh %29 : vector<2x32xf32>
    %c0_17 = arith.constant 0 : index
    %c0_18 = arith.constant 0 : index
    %31 = vector.load %arg9[%c0_17, %c0_18] : memref<2x32xf32, #tpu.memory_space<vmem>>, vector<2x32xf32>
    tpu.vector_store %arg9[%c0_17, %c0_18], %30 {strides = array<i32>} : memref<2x32xf32, #tpu.memory_space<vmem>>, vector<2x32xf32>,
    %c0_19 = arith.constant 0 : index
    %c0_20 = arith.constant 0 : index
    %32 = vector.load %arg6[%c0_19, %c0_20] : memref<32x128xf32, #tpu.memory_space<vmem>>, vector<32x128xf32>
    %cst_21 = arith.constant dense<0.000000e+00> : vector<2x128xf32>
    %33 = tpu.matmul %30, %32, %cst_21 {dimension_numbers = #tpu.dot_dimension_numbers<[1], [0], [0], [1], [0, 0, 1, 1], [], []>} : vector<2x32xf32>, vector<32x128xf32>, vector<2x128xf32> -> vector<2x128xf32>
    %c0_22 = arith.constant 0 : index
    %c0_23 = arith.constant 0 : index
    %34 = vector.load %arg7[%c0_22, %c0_23] : memref<1x128xf32, #tpu.memory_space<vmem>>, vector<1x128xf32>
    %35 = vector.broadcast %34 : vector<1x128xf32> to vector<2x128xf32>
    %36 = arith.addf %33, %35 : vector<2x128xf32>
    %cst_24 = arith.constant dense<0xFF800000> : vector<2xf32>
    %37 = vector.multi_reduction <maximumf>, %36, %cst_24 [1] : vector<2x128xf32> to vector<2xf32>
    %38 = vector.shape_cast %37 : vector<2xf32> to vector<2x1xf32>
    %39 = vector.broadcast %38 : vector<2x1xf32> to vector<2x128xf32>
    %40 = arith.subf %36, %39 : vector<2x128xf32>
    %41 = math.exp %40 : vector<2x128xf32>
    %cst_25 = arith.constant dense<0.000000e+00> : vector<2xf32>
    %42 = vector.multi_reduction <add>, %41, %cst_25 [1] : vector<2x128xf32> to vector<2xf32>
    %43 = vector.shape_cast %42 : vector<2xf32> to vector<2x1xf32>
    %44 = math.log %43 : vector<2x1xf32>
    %45 = vector.broadcast %44 : vector<2x1xf32> to vector<2x128xf32>
    %46 = arith.subf %40, %45 : vector<2x128xf32>
    %c0_26 = arith.constant 0 : index
    %c0_27 = arith.constant 0 : index
    %47 = vector.load %arg8[%c0_26, %c0_27] : memref<2x128xf32, #tpu.memory_space<vmem>>, vector<2x128xf32>
    tpu.vector_store %arg8[%c0_26, %c0_27], %46 {strides = array<i32>} : memref<2x128xf32, #tpu.memory_space<vmem>>, vector<2x128xf32>,
    return
  }
  func.func @transform_0(%arg0: i32) -> (i32, i32) {
    %c0_i32 = arith.constant 0 : i32
    %c0_i32_0 = arith.constant 0 : i32
    %c0_i32_1 = arith.constant 0 : i32
    return %c0_i32, %c0_i32_0 : i32, i32
  }
  func.func @transform_1(%arg0: i32) -> (i32, i32) {
    %c0_i32 = arith.constant 0 : i32
    %c0_i32_0 = arith.constant 0 : i32
    %c0_i32_1 = arith.constant 0 : i32
    return %c0_i32, %c0_i32_0 : i32, i32
  }
  func.func @transform_2(%arg0: i32) -> (i32, i32, i32) {
    %c0_i32 = arith.constant 0 : i32
    %c0_i32_0 = arith.constant 0 : i32
    %c0_i32_1 = arith.constant 0 : i32
    %c0_i32_2 = arith.constant 0 : i32
    return %c0_i32, %c0_i32_0, %c0_i32_1 : i32, i32, i32
  }
  func.func @transform_3(%arg0: i32) -> (i32, i32, i32) {
    %c0_i32 = arith.constant 0 : i32
    %c0_i32_0 = arith.constant 0 : i32
    %c0_i32_1 = arith.constant 0 : i32
    %c0_i32_2 = arith.constant 0 : i32
    return %c0_i32, %c0_i32_0, %c0_i32_1 : i32, i32, i32
  }
  func.func @transform_4(%arg0: i32) -> (i32, i32) {
    %c0_i32 = arith.constant 0 : i32
    %c0_i32_0 = arith.constant 0 : i32
    %c0_i32_1 = arith.constant 0 : i32
    return %c0_i32, %c0_i32_0 : i32, i32
  }
  func.func @transform_5(%arg0: i32) -> (i32, i32) {
    %c0_i32 = arith.constant 0 : i32
    %c0_i32_0 = arith.constant 0 : i32
    %c0_i32_1 = arith.constant 0 : i32
    return %c0_i32, %c0_i32_0 : i32, i32
  }
  func.func @transform_6(%arg0: i32) -> (i32, i32) {
    %c0_i32 = arith.constant 0 : i32
    %c0_i32_0 = arith.constant 0 : i32
    %c0_i32_1 = arith.constant 0 : i32
    return %c0_i32, %c0_i32_0 : i32, i32
  }
  func.func @transform_7(%arg0: i32) -> (i32, i32) {
    %c0_i32 = arith.constant 0 : i32
    %c0_i32_0 = arith.constant 0 : i32
    %c0_i32_1 = arith.constant 0 : i32
    return %c0_i32, %c0_i32_0 : i32, i32
  }
  func.func @transform_8(%arg0: i32) -> (i32, i32) {
    %c0_i32 = arith.constant 0 : i32
    %c0_i32_0 = arith.constant 0 : i32
    %c0_i32_1 = arith.constant 0 : i32
    return %c0_i32, %c0_i32_0 : i32, i32
  }
}

</mosaic_0001>

<bundles_post_ra>
// kernel: tpu_custom_call.1
= control target key start
LH: loop header
LB: loop body
LE: loop exit
PB: predicated region body
PF: predicated region fallthrough
CT: control target
= control target key end

     0   :  { %14 = vsyncpa [#allocation3], 0  ;;  %s1096_s0 = inlined_call_operand.hbm [shape: f32[2,32], index: 0, kind: input, shape index: {}]   ;;  %s1097_s1 = inlined_call_operand.vmem [shape: f32[2,32], index: 1, kind: input, shape index: {}]   ;;  %s1098_s2 = inlined_call_operand.hbm [shape: f32[2,8,32], index: 2, kind: input, shape index: {}]   ;;  %s1099_s3 = inlined_call_operand.vmem [shape: f32[2,1,8], index: 3, kind: input, shape index: {}]   ;;  %s1100_s4 = inlined_call_operand.hbm [shape: f32[32,32], index: 4, kind: input, shape index: {}]   ;;  %s1101_s5 = inlined_call_operand.hbm [shape: f32[32,128], index: 5, kind: input, shape index: {}]   ;;  %s1102_s6 = inlined_call_operand.vmem [shape: f32[1,128], index: 6, kind: input, shape index: {}]   ;;  %s1103_s7 = inlined_call_operand.hbm [shape: f32[2,128], index: 7, kind: output, shape index: {0}]   ;;  %s1104_s8 = inlined_call_operand.hbm [shape: f32[2,32], index: 8, kind: output, shape index: {1}]  }
   0x1   :  { %15 = vsyncpa [#allocation6], 0 }
   0x2   :  { %16 = vsyncpa [#allocation9], 0 }
   0x3   :  { %17 = vsyncpa [#allocation4], 0 }
   0x4   :  { %18 = vsyncpa [#allocation12], 0  ;;  %s920_s27 = smov [#allocation5]   ;;  %s778_s9 = scalar_lea.hbm %s1098_s2, 256 }
   0x5   :  { %s36_s28 = sshll.u32 %s920_s27, 4  ;;  %p779_p0 = scmp.ne.s32.totalorder %s1098_s2, %s778_s9  ;;  %s37_s28 = int_to_ptr.vmem [resolvable:$true] %s36_s28 }
   0x6   :  { %p782_p1 = scmp.lt.u32.totalorder %s778_s9, %s1098_s2 }
   0x8   :  { %p784_p2 = pnand %p782_p1, %p779_p0 }
   0xa   :  { %787 = shalt.err (!%p784_p2)
}
   0xb   :  { %s788_s14 = scalar_lea.vmem %s37_s28, 256  ;;  %p793_p4 = scmp.lt.s32.totalorder %s37_s28, %s37_s28 }
   0xc   :  { %p789_p3 = scmp.ne.s32.totalorder %s37_s28, %s788_s14  ;;  %p794_p5 = scmp.lt.s32.totalorder %s788_s14, %s788_s14 }
   0xe   :  { %p795_p6 = por %p794_p5, %p793_p4 }
  0x10   :  { %p796_p7 = pnand %p795_p6, %p789_p3 }
  0x12   :  { %799 = shalt.err (!%p796_p7)
}
  0x13   :  { %s921_s15 = smov 128   ;;  %s922_s16 = smov 8  }
  0x14   :  { %42 = dma.hbm_to_vmem [thread:$0]  %s1098_s2, 256, %s37_s28, [#allocation6], %s921_s15, %s921_s15, %s922_s16  }
  0x15   :  { %s923_s19 = smov [#allocation2]   ;;  %s924_s21 = smov [#allocation7]  }
  0x16   :  { %s25_s20 = sshll.u32 %s923_s19, 4  ;;  %s50_s22 = sshll.u32 %s924_s21, 4  ;;  %s26_s20 = int_to_ptr.vmem [resolvable:$true] %s25_s20  ;;  %s51_s22 = int_to_ptr.vmem [resolvable:$true] %s50_s22 }
  0x17   :  { %s800_s25 = scalar_lea.hbm %s1096_s0, 32 }
  0x18   :  { %p801_p8 = scmp.ne.s32.totalorder %s1096_s0, %s800_s25  ;;  %p804_p9 = scmp.lt.u32.totalorder %s800_s25, %s1096_s0 }
  0x1a   :  { %p806_p10 = pnand %p804_p9, %p801_p8 }
  0x1c   :  { %809 = shalt.err (!%p806_p10)
}
  0x1d   :  { %s810_s2 = scalar_lea.vmem %s26_s20, 32  ;;  %p815_p12 = scmp.lt.s32.totalorder %s26_s20, %s26_s20 }
  0x1e   :  { %p811_p11 = scmp.ne.s32.totalorder %s26_s20, %s810_s2  ;;  %p816_p13 = scmp.lt.s32.totalorder %s810_s2, %s810_s2 }
  0x20   :  { %p817_p0 = por %p816_p13, %p815_p12 }
  0x22   :  { %p818_p1 = pnand %p817_p0, %p811_p11 }
  0x24   :  { %821 = shalt.err (!%p818_p1)
}
  0x25   :  { %28 = dma.hbm_to_vmem [thread:$0]  %s1096_s0, 32, %s26_s20, [#allocation3]  }
  0x26   :  { %s822_s12 = scalar_lea.hbm %s1100_s4, 512 }
  0x27   :  { %p823_p2 = scmp.ne.s32.totalorder %s1100_s4, %s822_s12  ;;  %p826_p3 = scmp.lt.u32.totalorder %s822_s12, %s1100_s4 }
  0x29   :  { %p828_p4 = pnand %p826_p3, %p823_p2 }
  0x2b   :  { %831 = shalt.err (!%p828_p4)
}
  0x2c   :  { %s832_s19 = scalar_lea.vmem %s51_s22, 512  ;;  %p837_p6 = scmp.lt.s32.totalorder %s51_s22, %s51_s22 }
  0x2d   :  { %p833_p5 = scmp.ne.s32.totalorder %s51_s22, %s832_s19  ;;  %p838_p7 = scmp.lt.s32.totalorder %s832_s19, %s832_s19 }
  0x2f   :  { %p839_p8 = por %p838_p7, %p837_p6 }
  0x31   :  { %p840_p9 = pnand %p839_p8, %p833_p5 }
  0x33   :  { %843 = shalt.err (!%p840_p9)
}
  0x34   :  { %56 = dma.hbm_to_vmem [thread:$0]  %s1100_s4, 512, %s51_s22, [#allocation6], %s921_s15, %s921_s15, %s922_s16  }
  0x35   :  { %s925_s21 = smov [#allocation8]   ;;  %s844_s26 = scalar_lea.hbm %s1101_s5, 512 }
  0x36   :  { %s62_s23 = sshll.u32 %s925_s21, 4  ;;  %p845_p10 = scmp.ne.s32.totalorder %s1101_s5, %s844_s26  ;;  %s63_s23 = int_to_ptr.vmem [resolvable:$true] %s62_s23 }
  0x37   :  { %p848_p11 = scmp.lt.u32.totalorder %s844_s26, %s1101_s5 }
  0x39   :  { %p850_p12 = pnand %p848_p11, %p845_p10 }
  0x3b   :  { %853 = shalt.err (!%p850_p12)
}
  0x3c   :  { %s854_s28 = scalar_lea.vmem %s63_s23, 512  ;;  %p859_p0 = scmp.lt.s32.totalorder %s63_s23, %s63_s23 }
  0x3d   :  { %p855_p13 = scmp.ne.s32.totalorder %s63_s23, %s854_s28  ;;  %p860_p1 = scmp.lt.s32.totalorder %s854_s28, %s854_s28 }
  0x3f   :  { %p861_p2 = por %p860_p1, %p859_p0 }
  0x41   :  { %p862_p3 = pnand %p861_p2, %p855_p13 }
  0x43   :  { %865 = shalt.err (!%p862_p3)
}
  0x44   :  { %68 = dma.hbm_to_vmem [thread:$0]  %s1101_s5, 512, %s63_s23, [#allocation9], %s921_s15, %s921_s15, %s922_s16  }
  0x45   :  { %910 = dma.done.wait [#allocation3], 32  }
  0x46   :  { %911 = vsyncadd [#allocation3], 4294967264 }
  0x47   :  { %912 = dma.done.wait [#allocation6], 768  }
  0x48   :  { %913 = vsyncadd [#allocation6], 4294966528 }
  0x49   :  { %914 = dma.done.wait [#allocation9], 512  }
  0x4a   :  { %915 = vsyncadd [#allocation9], 4294966784  ;;  %v98_v0 = vlaneseq  ;;  %v926_v1 = vmov 0.0   ;;  %vm927_vm0 = vmmov 0   ;;  %v928_v2 = vmov 1966171168  }
  0x4b   :  { %699 = vmatprep.subr.mxu1 %v926_v1  ;;  %694 = vmatprep.subr.mxu0 %v926_v1  ;;  %v96_v3 = vunpack.c.l.s4 %v928_v2  ;;  %vm111_vm1 = vcmask 261120   ;;  %v84_v7 = vld [vmem:[#allocation5 + $0x8] sm:$0xff]  ;;  %v83_v8 = vld [vmem:[#allocation5] sm:$0xff]  ;;  %vm264_vm2 = vcmask 253952   ;;  %v278_v27 = vld [vmem:[%s1099_s3 + $0x1] sm:$0x1] }
  0x4c   :  { %701 = vmatprep.mubr.msk.f32.mxu1 %vm927_vm0, %v926_v1  ;;  %v99_v4 = vshrl.u32 %v98_v0, 7  ;;  %696 = vmatprep.mubr.msk.f32.mxu0 %vm927_vm0, %v926_v1  ;;  %v666_v9 = vld.sshfl [vmem:[%s1097_s1] sm:$0x11 pattern:$0x75316420]  ;;  %vm281_vm3 = vcmask 57344  }
  0x4d   :  { %v97_v5 = vunpack.c.0.s8 %v96_v3  ;;  %700 = vmatpush3.xpose.msk.msra.mxu1 %vm111_vm1, %v84_v7  ;;  %695 = vmatpush3.xpose.msk.msra.mxu0 %vm111_vm1, %v83_v8  ;;  %v94_v10 = vcombine.high %v666_v9, %v666_v9  ;;  %v277_v28 = vld [vmem:[%s1099_s3] sm:$0x1]  ;;  %v929_v45 = vmov 0.0|0.0   ;;  %vm304_vm4 = vcmask 64512   ;;  %v452_v50 = vld [vmem:[#allocation7] sm:$0xff]  ;;  %v454_v55 = vld [vmem:[#allocation7 + $0x10] sm:$0xff] }
  0x4e   :  { %709 = vmatprep.subr.mxu1 %v926_v1  ;;  %704 = vmatprep.subr.mxu0 %v926_v1  ;;  %v453_v51 = vld [vmem:[#allocation7 + $0x8] sm:$0xff]  ;;  %v455_v56 = vld [vmem:[#allocation7 + $0x18] sm:$0xff]  ;;  %vm459_vm5 = vcmask 1041409   ;;  %v537_v0 = vld [vmem:[#allocation8] sm:$0xff]  ;;  %vm535_vm6 = vcmask 254976   ;;  %vm621_vm7 = vcmask 1041408  }
  0x4f   :  { %v100_v6 = vsub.s32 %v97_v5, %v99_v4  ;;  %v737_v53 = vpack.c.bf16 %v453_v51, %v452_v50  ;;  %v740_v57 = vpack.c.bf16 %v455_v56, %v454_v55  ;;  %v538_v2 = vld [vmem:[#allocation8 + $0x8] sm:$0xff]  ;;  %v539_v3 = vld [vmem:[#allocation8 + $0x10] sm:$0xff]  ;;  %v540_v5 = vld [vmem:[#allocation8 + $0x18] sm:$0xff]  ;;  %s930_s12 = smov [#allocation11]  }
  0x50   :  { %v743_v4 = vpack.c.bf16 %v538_v2, %v537_v0  ;;  %s651_s13 = sshll.u32 %s930_s12, 4  ;;  %s652_s13 = int_to_ptr.vmem [resolvable:$true] %s651_s13 }
  0x51   :  { %v101_v11 = vrot.slane %v666_v9, %v100_v6  ;;  %v108_v12 = vrot.slane %v94_v10, %v100_v6  ;;  %v451_v6 = vld [vmem:[#allocation2] sm:$0x3]  ;;  %s866_s14 = scalar_lea.vmem %s652_s13, 32  ;;  %p871_p5 = scmp.lt.s32.totalorder %s652_s13, %s652_s13 }
  0x52   :  { %p867_p4 = scmp.ne.s32.totalorder %s652_s13, %s866_s14  ;;  %p872_p6 = scmp.lt.s32.totalorder %s866_s14, %s866_s14 }
  0x53   :  { %697 = vmatmul.mubr.msk.f32.vlgmr.msra.gmra.mrb[0].mxu0 %vm111_vm1, %v101_v11  ;;  %702 = vmatmul.mubr.msk.f32.vlgmr.msra.gmra.mrb[0].mxu1 %vm111_vm1, %v108_v12  ;;  %v263_v13 = vmul.f32 %v108_v12, %v108_v12  ;;  %v262_v14 = vmul.f32 %v101_v11, %v101_v11  ;;  %v674_v11 = vld [vmem:[%s1102_s6] ss:$0 sm:$0xff] }
  0x54   :  { %705 = vmatpush3.msra.mxu0 %v83_v8  ;;  %710 = vmatpush3.msra.mxu1 %v84_v7  ;;  %p873_p7 = por %p872_p6, %p871_p5 }
  0x55   :  { %711 = vmatprep.mubr.msk.f32.mxu1 %vm927_vm0, %v926_v1  ;;  %v268_v15 = vsel %vm264_vm2, %v263_v13, 0.0  ;;  %706 = vmatprep.mubr.msk.f32.mxu0 %vm927_vm0, %v926_v1  ;;  %v265_v16 = vsel %vm264_vm2, %v262_v14, 0.0 }
  0x56   :  { %269 = vadd.xlane.f32.xlu0 %v268_v15  ;;  %736 = vmatprep.subr.bf16.mxu0 %v929_v45  ;;  %p874_p8 = pnand %p873_p7, %p867_p4 }
  0x57   :  { %742 = vmatprep.subr.bf16.mxu1 %v929_v45 }
  0x5a   :  { %266 = vadd.xlane.f32.xlu0 %v265_v16 }
  0xe3   :  { %v270_v17 = vpop.xlane.xlu0 %269 }
  0xe4   :  { %v272_v20 = vmax.f32 %v270_v17, 1e-12 }
  0xe7   :  { %v267_v18 = vpop.xlane.xlu0 %266 }
  0xe8   :  { %v271_v19 = vmax.f32 %v267_v18, 1e-12 }
  0xea   :  { %760 = vrsqrt.f32 %v271_v19 }
  0xeb   :  { %762 = vrsqrt.f32 %v272_v20 }
  0xf4   :  { %v761_v21 = vpop.eup %760 }
  0xf5   :  { %v763_v22 = vpop.eup %762 }
 0x126   :  { %v183_v23 = vpop.f32.mrb[0].mxu0  ;;  %v258_v24 = vpop.f32.mrb[0].mxu1 }
 0x127   :  { %v275_v25 = vmul.f32 %v761_v21, %v183_v23  ;;  %v698_v26 = vpop.f32.mrb[1].mxu0  ;;  %v276_v29 = vmul.f32 %v763_v22, %v258_v24  ;;  %v703_v30 = vpop.f32.mrb[1].mxu1 }
 0x129   :  { %v280_v31 = vmul.f32 %v278_v27, %v276_v29  ;;  %v279_v32 = vmul.f32 %v277_v28, %v275_v25 }
 0x12b   :  { %v285_v33 = vsel %vm281_vm3, %v280_v31, -inf  ;;  %v282_v34 = vsel %vm281_vm3, %v279_v32, -inf }
 0x12c   :  { %286 = vmax.xlane.f32.xlu1 %v285_v33 }
 0x130   :  { %283 = vmax.xlane.f32.xlu1 %v282_v34 }
 0x1b9   :  { %v287_v35 = vpop.xlane.xlu1 %286 }
 0x1ba   :  { %v289_v36 = vsub.f32 %v280_v31, %v287_v35 }
 0x1bc   :  { %v292_v37 = vmul.f32 1.442695, %v289_v36 }
 0x1bd   :  { %v284_v38 = vpop.xlane.xlu1 %283 }
 0x1be   :  { %764 = vpow2.f32 %v292_v37  ;;  %v288_v39 = vsub.f32 %v279_v32, %v284_v38 }
 0x1c0   :  { %v290_v40 = vmul.f32 1.442695, %v288_v39 }
 0x1c2   :  { %766 = vpow2.f32 %v290_v40 }
 0x1c8   :  { %v765_v41 = vpop.eup %764 }
 0x1c9   :  { %v297_v42 = vsel %vm281_vm3, %v765_v41, 0.0 }
 0x1ca   :  { %298 = vadd.xlane.f32.xlu0 %v297_v42 }
 0x1cc   :  { %v767_v43 = vpop.eup %766 }
 0x1cd   :  { %v294_v44 = vsel %vm281_vm3, %v767_v43, 0.0 }
 0x1ce   :  { %295 = vadd.xlane.f32.xlu1 %v294_v44 }
 0x257   :  { %v299_v46 = vpop.xlane.xlu0 %298 }
 0x258   :  { %768 = vrcp.f32 %v299_v46 }
 0x25b   :  { %v296_v47 = vpop.xlane.xlu1 %295 }
 0x25c   :  { %770 = vrcp.f32 %v296_v47 }
 0x262   :  { %v769_v48 = vpop.eup %768 }
 0x263   :  { %v303_v49 = vmul.f32 %v769_v48, %v765_v41 }
 0x265   :  { %712 = vmatmul.mubr.msk.f32.vlgmr.msra.gmra.mrb[2].mxu1 %vm304_vm4, %v303_v49 }
 0x266   :  { %v771_v52 = vpop.eup %770  ;;  %733 = vmatprep.mubr.msk.f32.mxu1 %vm927_vm0, %v926_v1  ;;  %744 = vmatpush3.bf16.msra.mxu1 %v743_v4 }
 0x267   :  { %v302_v54 = vmul.f32 %v771_v52, %v767_v43  ;;  %745 = vmatprep.subr.bf16.mxu1 %v929_v45 }
 0x269   :  { %707 = vmatmul.mubr.msk.f32.vlgmr.msra.gmra.mrb[2].mxu0 %vm304_vm4, %v302_v54 }
 0x26a   :  { %738 = vmatpush3.bf16.msra.mxu0 %v737_v53  ;;  %722 = vmatprep.mubr.msk.f32.mxu0 %vm927_vm0, %v926_v1  ;;  %v746_v1 = vpack.c.bf16 %v540_v5, %v539_v3 }
 0x26b   :  { %739 = vmatprep.subr.bf16.mxu0 %v929_v45 }
 0x26c   :  { %747 = vmatpush3.bf16.msra.mxu1 %v746_v1 }
 0x26e   :  { %741 = vmatpush3.bf16.msra.mxu0 %v740_v57 }
 0x338   :  { %v447_v58 = vpop.f32.mrb[2].mxu1 }
 0x339   :  { %v713_v59 = vpop.f32.mrb[3].mxu1  ;;  %v458_v60 = vrot.slane %v447_v58, 7 }
 0x33c   :  { %v374_v61 = vpop.f32.mrb[2].mxu0 }
 0x33d   :  { %v460_v62 = vsel %vm459_vm5, %v458_v60, %v374_v61  ;;  %v708_v63 = vpop.f32.mrb[3].mxu0 }
 0x33e   :  { %723 = vmatmul.mubr.msk.f32.vlgmr.msra.gmra.mrb[4].mxu0 %vm111_vm1, %v460_v62 }
 0x411   :  { %v529_v7 = vpop.f32.mrb[4].mxu0 }
 0x412   :  { %v533_v8 = vadd.f32 %v529_v7, %v451_v6  ;;  %v724_v9 = vpop.f32.mrb[5].mxu0 }
 0x414   :  { %772 = vtanh.f32 %v533_v8 }
 0x41e   :  { %v773_v10 = vpop.eup %772 }
 0x41f   :  { %734 = vmatmul.mubr.msk.f32.vlgmr.msra.gmra.mrb[4].mxu1 %vm111_vm1, %v773_v10  ;;  %536 = vst.msk [vmem:[#allocation11] sm:$0x3] %vm535_vm6, %v773_v10 }
 0x4f2   :  { %v617_v12 = vpop.f32.mrb[4].mxu1 }
 0x4f3   :  { %v618_v13 = vadd.f32 %v674_v11, %v617_v12  ;;  %v735_v14 = vpop.f32.mrb[5].mxu1 }
 0x4f5   :  { %v622_v15 = vsel %vm621_vm7, %v618_v13, -inf }
 0x4f6   :  { %623 = vmax.xlane.f32.xlu0 %v622_v15 }
 0x583   :  { %v624_v16 = vpop.xlane.xlu0 %623 }
 0x584   :  { %v625_v17 = vsub.f32 %v618_v13, %v624_v16 }
 0x586   :  { %v626_v18 = vmul.f32 1.442695, %v625_v17 }
 0x588   :  { %774 = vpow2.f32 %v626_v18 }
 0x592   :  { %v775_v19 = vpop.eup %774 }
 0x593   :  { %v628_v20 = vsel %vm621_vm7, %v775_v19, 0.0 }
 0x594   :  { %629 = vadd.xlane.f32.xlu1 %v628_v20 }
 0x595   :  { %877 = shalt.err (!%p874_p8)
}
 0x596   :  { %s878_s18 = scalar_lea.hbm %s1104_s8, 32 }
 0x597   :  { %p879_p9 = scmp.ne.s32.totalorder %s1104_s8, %s878_s18  ;;  %p882_p10 = scmp.lt.u32.totalorder %s878_s18, %s1104_s8 }
 0x599   :  { %p884_p11 = pnand %p882_p10, %p879_p9 }
 0x59b   :  { %887 = shalt.err (!%p884_p11)
}
 0x59c   :  { %654 = dma.vmem_to_hbm [thread:$0]  %s652_s13, 32, %s1104_s8, [#allocation12]  }
 0x59d   :  { %s931_s25 = smov [#allocation10]  }
 0x59e   :  { %s641_s26 = sshll.u32 %s931_s25, 4  ;;  %s642_s26 = int_to_ptr.vmem [resolvable:$true] %s641_s26 }
 0x59f   :  { %s888_s27 = scalar_lea.vmem %s642_s26, 32  ;;  %p893_p13 = scmp.lt.s32.totalorder %s642_s26, %s642_s26 }
 0x5a0   :  { %p889_p12 = scmp.ne.s32.totalorder %s642_s26, %s888_s27  ;;  %p894_p0 = scmp.lt.s32.totalorder %s888_s27, %s888_s27 }
 0x5a2   :  { %p895_p1 = por %p894_p0, %p893_p13 }
 0x5a4   :  { %p896_p2 = pnand %p895_p1, %p889_p12 }
 0x621   :  { %v630_v21 = vpop.xlane.xlu1 %629 }
 0x622   :  { %776 = vlog2.f32 %v630_v21 }
 0x62c   :  { %v777_v22 = vpop.eup %776 }
 0x62d   :  { %v632_v23 = vmul.f32 0.6931472, %v777_v22 }
 0x62f   :  { %v633_v24 = vsub.f32 %v625_v17, %v632_v23 }
 0x631   :  { %634 = vst [vmem:[#allocation10] sm:$0x3] %v633_v24 }
 0x632   :  { %899 = shalt.err (!%p896_p2)
}
 0x633   :  { %s900_s8 = scalar_lea.hbm %s1103_s7, 32 }
 0x634   :  { %p901_p3 = scmp.ne.s32.totalorder %s1103_s7, %s900_s8  ;;  %p904_p4 = scmp.lt.u32.totalorder %s900_s8, %s1103_s7 }
 0x636   :  { %p906_p5 = pnand %p904_p4, %p901_p3 }
 0x638   :  { %909 = shalt.err (!%p906_p5)
}
 0x639   :  { %644 = dma.vmem_to_hbm [thread:$0]  %s642_s26, 32, %s1103_s7, [#allocation4]  }
 0x63a   :  { %916 = dma.done.wait [#allocation4], 32  }
 0x63b   :  { %917 = vsyncadd [#allocation4], 4294967264 }
 0x63c   :  { %918 = dma.done.wait [#allocation12], 32  }
 0x63d   :  { %919 = vsyncadd [#allocation12], 4294967264 }
 0x63e   :  { %661 = vsyncpa [#allocation3], 1 }
 0x63f   :  { %662 = vsyncpa [#allocation6], 1 }
 0x640   :  { %663 = vsyncpa [#allocation9], 1 }
 0x641   :  { %664 = vsyncpa [#allocation4], 1 }
 0x642   :  { %665 = vsyncpa [#allocation12], 1 }

</bundles_post_ra>
